<compile_context>
chip_gen: v7x
topology: tpu7x:2x2x1
jax: 0.10.0
libtpu: 0.0.40
codegen_flags: <defaults>
</compile_context>

<pallas_src>
import functools

import jax
import jax.numpy as jnp
from jax import lax
from jax.experimental import pallas as pl
from jax.experimental.pallas import tpu as pltpu


def _round_up(n, m):
    return ((n + m - 1) // m) * m


def _num_tensorcores():
    # Best-effort chip-generation gate: only v7x has 2 TensorCores per chip.
    try:
        kind = jax.devices()[0].device_kind.lower()
        if "v7" in kind or "tpu7" in kind:
            return 2
    except Exception:
        pass
    return 1


def _mlp_kernel(x_ref, w1b1_ref, w2b2_ref, w3b3_ref, o_ref, *, d_in, d_h1, d_h2, chunk):
    """Fused 3-layer MLP over one (bb, d_in) batch tile.

    The DMA tile (bb rows) is decoupled from the compute tile (`chunk` rows):
    an unrolled fori_loop walks `chunk`-row sub-slices so the (chunk, 30)/(chunk, 20)
    intermediates stay within the vreg file while HBM DMAs remain large.
    """
    # Hoist the tiny, VMEM-resident weights out of the inner loop; feed the MXU
    # bf16 operands with f32 accumulation. Biases stay f32.
    w1 = w1b1_ref[:d_in, :].astype(jnp.bfloat16)
    b1 = w1b1_ref[d_in:d_in + 1, :]
    w2 = w2b2_ref[:d_h1, :].astype(jnp.bfloat16)
    b2 = w2b2_ref[d_h1:d_h1 + 1, :]
    w3 = w3b3_ref[:d_h2, :].astype(jnp.bfloat16)
    b3 = w3b3_ref[d_h2:d_h2 + 1, :]

    n_chunks = x_ref.shape[0] // chunk  # static; bb is a multiple of chunk

    def body(c, carry):
        r = pl.multiple_of(c * chunk, chunk)
        xb = x_ref[pl.ds(r, chunk), :].astype(jnp.bfloat16)

        h1 = jnp.dot(xb, w1, preferred_element_type=jnp.float32) + b1
        h1 = jnp.maximum(h1, 0.0).astype(jnp.bfloat16)

        h2 = jnp.dot(h1, w2, preferred_element_type=jnp.float32) + b2
        h2 = jnp.maximum(h2, 0.0).astype(jnp.bfloat16)

        logits = jnp.dot(h2, w3, preferred_element_type=jnp.float32) + b3
        o_ref[pl.ds(r, chunk), :] = logits.astype(o_ref.dtype)
        return carry

    lax.fori_loop(0, n_chunks, body, 0, unroll=True)


@functools.partial(jax.jit, static_argnames=("block_b", "chunk_rows"))
def mlp_forward(x, w1, b1, w2, b2, w3, b3, *, block_b=2048, chunk_rows=256):
    """x: (B, D_in) bf16/f32. Weights (in, out); biases (1, out). Output f32."""
    B, d_in = x.shape
    d_h1 = w1.shape[1]
    d_h2 = w2.shape[1]
    d_out = w3.shape[1]

    # ---- tile selection -----------------------------------------------------
    # Compute sub-tile (chunk rows, multiple of 16 for bf16 sublane packing),
    # DMA tile bb = multiple of chunk (Pallas pads the ragged last block; the
    # padded rows are computed but never written back).
    chunk = min(chunk_rows, _round_up(min(block_b, B), 16))
    bb = _round_up(min(block_b, B), chunk)

    # Only v7x (2 TCs) benefits from forcing >=2 "parallel" grid steps, and only
    # if each per-core tile stays DMA-efficient; v5e/v6e keep a single step.
    if _num_tensorcores() >= 2 and pl.cdiv(B, bb) < 2 and B >= 2 * 512:
        bb = _round_up(pl.cdiv(B, 2), chunk)

    grid = (pl.cdiv(B, bb),)

    # ---- pack each layer's weight and bias into one resident stream ---------
    # [W; b] -> (in+1, out); static ref slices in-kernel are free, and this cuts
    # the input DMA streams from 7 to 4 (shorter pipeline prologue).
    w1b1 = jnp.concatenate([w1, b1], axis=0)
    w2b2 = jnp.concatenate([w2, b2], axis=0)
    w3b3 = jnp.concatenate([w3, b3], axis=0)

    resident = lambda a: pl.BlockSpec(a.shape, lambda i: (0, 0))

    flops = 2 * B * (d_in * d_h1 + d_h1 * d_h2 + d_h2 * d_out)
    bytes_accessed = (
        x.size * x.dtype.itemsize
        + B * d_out * 4
        + sum(a.size * a.dtype.itemsize for a in (w1b1, w2b2, w3b3))
    )

    kernel = functools.partial(
        _mlp_kernel, d_in=d_in, d_h1=d_h1, d_h2=d_h2, chunk=chunk
    )

    return pl.pallas_call(
        kernel,
        out_shape=jax.ShapeDtypeStruct((B, d_out), jnp.float32),
        grid_spec=pl.GridSpec(
            grid=grid,
            in_specs=[
                pl.BlockSpec((bb, d_in), lambda i: (i, 0)),   # streamed x tile
                resident(w1b1),                               # params: constant
                resident(w2b2),                               # block index ->
                resident(w3b3),                               # VMEM-resident
            ],
            out_specs=pl.BlockSpec((bb, d_out), lambda i: (i, 0)),
        ),
        compiler_params=pltpu.CompilerParams(
            dimension_semantics=("parallel",),
        ),
        cost_estimate=pl.CostEstimate(
            flops=flops, transcendentals=0, bytes_accessed=bytes_accessed
        ),
    )(x, w1b1, w2b2, w3b3)


def init_params(key, input_dims, output_dims):
    """Deterministic init mimicking torch.nn.Linear default (uniform +-1/sqrt(fan_in)).
    Weights stored as (in, out) = PyTorch weight transposed."""
    dims = [(input_dims, 30), (30, 20), (20, output_dims)]
    params = []
    for fan_in, fan_out in dims:
        key, kw, kb = jax.random.split(key, 3)
        bound = 1.0 / jnp.sqrt(jnp.float32(fan_in))
        w = jax.random.uniform(kw, (fan_in, fan_out), jnp.float32, -bound, bound)
        b = jax.random.uniform(kb, (1, fan_out), jnp.float32, -bound, bound)
        params += [w, b]
    return params


def mlp_reference_bf16(x, w1, b1, w2, b2, w3, b3):
    """Reference mimicking the kernel's bf16-operand / f32-accumulate math."""
    bf = lambda a: a.astype(jnp.bfloat16).astype(jnp.float32)
    h1 = jnp.maximum(bf(x) @ bf(w1) + b1, 0.0)
    h2 = jnp.maximum(bf(h1) @ bf(w2) + b2, 0.0)
    return bf(h2) @ bf(w3) + b3


if __name__ == "__main__":
    key = jax.random.PRNGKey(0)
    batch, input_dims, output_dims = 256, 16, 4

    kx, kp = jax.random.split(key)
    x = jax.random.normal(kx, (batch, input_dims), jnp.float32)
    w1, b1, w2, b2, w3, b3 = init_params(kp, input_dims, output_dims)

    # bf16 on the dominant HBM stream (x); weights stay f32 (tiny, resident)
    # and are cast to bf16 MXU operands inside the kernel.
    x_bf = x.astype(jnp.bfloat16)

    out = mlp_forward(x_bf, w1, b1, w2, b2, w3, b3)
    out = jax.block_until_ready(out)

    ref = mlp_reference_bf16(x_bf.astype(jnp.float32), w1, b1, w2, b2, w3, b3)

    assert out.shape == (batch, output_dims), out.shape
    assert jnp.allclose(out, ref, atol=1e-2, rtol=1e-2), "mismatch vs reference"

    print("KERNEL_OK")
</pallas_src>

<mosaic_0001>
module attributes {stable_mosaic.version = 11 : i64} {
  func.func @_mlp_kernel(%arg0: i32, %arg1: memref<256x16xbf16, #tpu.memory_space<vmem>>, %arg2: memref<17x30xf32, #tpu.memory_space<vmem>>, %arg3: memref<31x20xf32, #tpu.memory_space<vmem>>, %arg4: memref<21x4xf32, #tpu.memory_space<vmem>>, %arg5: memref<256x4xf32, #tpu.memory_space<vmem>>) attributes {dimension_semantics = [#tpu.dimension_semantics<parallel>], iteration_bounds = array<i64: 1>, scalar_prefetch = 0 : i64, scratch_operands = 0 : i64, tpu.core_type = #tpu.core_type<tc>, window_params = [{transform_indices = @transform_0, window_bounds = array<i64: 256, 16>}, {pipeline_mode = #tpu.pipeline_mode<synchronous>, transform_indices = @transform_1, window_bounds = array<i64: 17, 30>}, {pipeline_mode = #tpu.pipeline_mode<synchronous>, transform_indices = @transform_2, window_bounds = array<i64: 31, 20>}, {pipeline_mode = #tpu.pipeline_mode<synchronous>, transform_indices = @transform_3, window_bounds = array<i64: 21, 4>}, {transform_indices = @transform_4, window_bounds = array<i64: 256, 4>}]} {
    %c0 = arith.constant 0 : index
    %c0_0 = arith.constant 0 : index
    %0 = vector.load %arg2[%c0, %c0_0] : memref<17x30xf32, #tpu.memory_space<vmem>>, vector<16x30xf32>
    %1 = arith.truncf %0 : vector<16x30xf32> to vector<16x30xbf16>
    %c16 = arith.constant 16 : index
    %c0_1 = arith.constant 0 : index
    %2 = vector.load %arg2[%c16, %c0_1] : memref<17x30xf32, #tpu.memory_space<vmem>>, vector<1x30xf32>
    %c0_2 = arith.constant 0 : index
    %c0_3 = arith.constant 0 : index
    %3 = vector.load %arg3[%c0_2, %c0_3] : memref<31x20xf32, #tpu.memory_space<vmem>>, vector<30x20xf32>
    %4 = arith.truncf %3 : vector<30x20xf32> to vector<30x20xbf16>
    %c30 = arith.constant 30 : index
    %c0_4 = arith.constant 0 : index
    %5 = vector.load %arg3[%c30, %c0_4] : memref<31x20xf32, #tpu.memory_space<vmem>>, vector<1x20xf32>
    %c0_5 = arith.constant 0 : index
    %c0_6 = arith.constant 0 : index
    %6 = vector.load %arg4[%c0_5, %c0_6] : memref<21x4xf32, #tpu.memory_space<vmem>>, vector<20x4xf32>
    %7 = arith.truncf %6 : vector<20x4xf32> to vector<20x4xbf16>
    %c20 = arith.constant 20 : index
    %c0_7 = arith.constant 0 : index
    %8 = vector.load %arg4[%c20, %c0_7] : memref<21x4xf32, #tpu.memory_space<vmem>>, vector<1x4xf32>
    %c0_i32 = arith.constant 0 : i32
    %c256_i32 = arith.constant 256 : i32
    %9 = arith.muli %c0_i32, %c256_i32 : i32
    %10 = tpu.assume_multiple %9, 256 : i32
    %11 = arith.index_cast %10 : i32 to index
    %c0_8 = arith.constant 0 : index
    %12 = vector.load %arg1[%11, %c0_8] : memref<256x16xbf16, #tpu.memory_space<vmem>>, vector<256x16xbf16>
    %cst = arith.constant dense<0.000000e+00> : vector<256x30xf32>
    %13 = tpu.matmul %12, %1, %cst {dimension_numbers = #tpu.dot_dimension_numbers<[1], [0], [0], [1], [0, 0, 1, 1], [], []>} : vector<256x16xbf16>, vector<16x30xbf16>, vector<256x30xf32> -> vector<256x30xf32>
    %14 = vector.broadcast %2 : vector<1x30xf32> to vector<256x30xf32>
    %15 = arith.addf %13, %14 : vector<256x30xf32>
    %cst_9 = arith.constant 0.000000e+00 : f32
    %16 = vector.broadcast %cst_9 : f32 to vector<256x30xf32>
    %17 = arith.maximumf %15, %16 : vector<256x30xf32>
    %18 = arith.truncf %17 : vector<256x30xf32> to vector<256x30xbf16>
    %cst_10 = arith.constant dense<0.000000e+00> : vector<256x20xf32>
    %19 = tpu.matmul %18, %4, %cst_10 {dimension_numbers = #tpu.dot_dimension_numbers<[1], [0], [0], [1], [0, 0, 1, 1], [], []>} : vector<256x30xbf16>, vector<30x20xbf16>, vector<256x20xf32> -> vector<256x20xf32>
    %20 = vector.broadcast %5 : vector<1x20xf32> to vector<256x20xf32>
    %21 = arith.addf %19, %20 : vector<256x20xf32>
    %cst_11 = arith.constant 0.000000e+00 : f32
    %22 = vector.broadcast %cst_11 : f32 to vector<256x20xf32>
    %23 = arith.maximumf %21, %22 : vector<256x20xf32>
    %24 = arith.truncf %23 : vector<256x20xf32> to vector<256x20xbf16>
    %cst_12 = arith.constant dense<0.000000e+00> : vector<256x4xf32>
    %25 = tpu.matmul %24, %7, %cst_12 {dimension_numbers = #tpu.dot_dimension_numbers<[1], [0], [0], [1], [0, 0, 1, 1], [], []>} : vector<256x20xbf16>, vector<20x4xbf16>, vector<256x4xf32> -> vector<256x4xf32>
    %26 = vector.broadcast %8 : vector<1x4xf32> to vector<256x4xf32>
    %27 = arith.addf %25, %26 : vector<256x4xf32>
    %28 = arith.index_cast %10 : i32 to index
    %c0_13 = arith.constant 0 : index
    %29 = vector.load %arg5[%28, %c0_13] : memref<256x4xf32, #tpu.memory_space<vmem>>, vector<256x4xf32>
    tpu.vector_store %arg5[%28, %c0_13], %27 {strides = array<i32>} : memref<256x4xf32, #tpu.memory_space<vmem>>, vector<256x4xf32>,
    %c1_i32 = arith.constant 1 : i32
    return
  }
  func.func @transform_0(%arg0: i32) -> (i32, i32) {
    %c0_i32 = arith.constant 0 : i32
    %c0_i32_0 = arith.constant 0 : i32
    return %arg0, %c0_i32 : i32, i32
  }
  func.func @transform_1(%arg0: i32) -> (i32, i32) {
    %c0_i32 = arith.constant 0 : i32
    %c0_i32_0 = arith.constant 0 : i32
    %c0_i32_1 = arith.constant 0 : i32
    return %c0_i32, %c0_i32_0 : i32, i32
  }
  func.func @transform_2(%arg0: i32) -> (i32, i32) {
    %c0_i32 = arith.constant 0 : i32
    %c0_i32_0 = arith.constant 0 : i32
    %c0_i32_1 = arith.constant 0 : i32
    return %c0_i32, %c0_i32_0 : i32, i32
  }
  func.func @transform_3(%arg0: i32) -> (i32, i32) {
    %c0_i32 = arith.constant 0 : i32
    %c0_i32_0 = arith.constant 0 : i32
    %c0_i32_1 = arith.constant 0 : i32
    return %c0_i32, %c0_i32_0 : i32, i32
  }
  func.func @transform_4(%arg0: i32) -> (i32, i32) {
    %c0_i32 = arith.constant 0 : i32
    %c0_i32_0 = arith.constant 0 : i32
    return %arg0, %c0_i32 : i32, i32
  }
}

</mosaic_0001>

<bundles_post_ra>
// kernel: mlp_forward.1
= control target key start
LH: loop header
LB: loop body
LE: loop exit
PB: predicated region body
PF: predicated region fallthrough
CT: control target
= control target key end

     0   :  { %vm151_vm0 = vcmask 130048   ;;  %vm462_vm1 = vcmask 1046528   ;;  %vm728_vm2 = vcmask 1041408   ;;  %vm413_vm3 = vcmask 244736   ;;  %s1569_s1 = inlined_call_operand.vmem [shape: f32[17,30], index: 1, kind: input, shape index: {}]   ;;  %s1570_s0 = inlined_call_operand.vmem [shape: bf16[256,16], index: 0, kind: input, shape index: {}]   ;;  %s1571_s2 = inlined_call_operand.vmem [shape: f32[31,20], index: 2, kind: input, shape index: {}]   ;;  %s1572_s3 = inlined_call_operand.vmem [shape: f32[21,4], index: 3, kind: input, shape index: {}]   ;;  %s1573_s4 = inlined_call_operand.vmem [shape: f32[256,4], index: 4, kind: output, shape index: {}]  }
   0x1   :  { %v18_v0 = vld [vmem:[%s1569_s1] sm:$0xff]  ;;  %v19_v1 = vld [vmem:[%s1569_s1 + $0x8] sm:$0xff]  ;;  %v1162_v5 = vld [vmem:[%s1570_s0 + $0x10] sm:$0xff]   ;;  %vm679_vm4 = vcmask 162816   ;;  %vm893_vm5 = vcmask 31744  }
   0x2   :  { %v20_v2 = vpack.c.bf16 %v19_v1, %v18_v0  ;;  %v1160_v3 = vld [vmem:[%s1570_s0] sm:$0xff]   ;;  %v1161_v4 = vld [vmem:[%s1570_s0 + $0x8] sm:$0xff]   ;;  %v1163_v6 = vld [vmem:[%s1570_s0 + $0x18] sm:$0xff]  }
   0x3   :  { %1052 = vmatprep.mubr.msk.bf16.mxu0 %vm151_vm0, %v1160_v3  ;;  %v1168_v7 = vld [vmem:[%s1570_s0 + $0x40] sm:$0xff]   ;;  %v1169_v8 = vld [vmem:[%s1570_s0 + $0x48] sm:$0xff]   ;;  %v1170_v9 = vld [vmem:[%s1570_s0 + $0x50] sm:$0xff]  }
   0x4   :  { %1050 = vmatprep.subr.bf16.mxu0 %v20_v2  ;;  %1156 = vmatprep.subr.bf16.mxu1 %v20_v2  ;;  %v1164_v10 = vld [vmem:[%s1570_s0 + $0x20] sm:$0xff]   ;;  %v1171_v11 = vld [vmem:[%s1570_s0 + $0x58] sm:$0xff]   ;;  %v23_v14 = vld [vmem:[%s1571_s2 + $0x8] sm:$0xff] }
   0x5   :  { %1051 = vmatpush3.bf16.msra.mxu0 %v20_v2  ;;  %1157 = vmatpush3.bf16.msra.mxu1 %v20_v2  ;;  %v1172_v12 = vld [vmem:[%s1570_s0 + $0x60] sm:$0xff]   ;;  %v24_v16 = vld [vmem:[%s1571_s2 + $0x10] sm:$0xff]  ;;  %v25_v17 = vld [vmem:[%s1571_s2 + $0x18] sm:$0x3f] }
   0x6   :  { %1068 = vmatprep.mubr.msk.bf16.mxu1 %vm151_vm0, %v1168_v7  ;;  %v22_v13 = vld [vmem:[%s1571_s2] sm:$0xff]  ;;  %v1165_v18 = vld [vmem:[%s1570_s0 + $0x28] sm:$0xff]   ;;  %v27_v19 = vpack.c.bf16 %v25_v17, %v24_v16  ;;  %v1166_v20 = vld [vmem:[%s1570_s0 + $0x30] sm:$0xff]  }
   0x7   :  { %v26_v15 = vpack.c.bf16 %v23_v14, %v22_v13  ;;  %v1173_v22 = vld [vmem:[%s1570_s0 + $0x68] sm:$0xff]   ;;  %v1174_v23 = vld [vmem:[%s1570_s0 + $0x70] sm:$0xff]   ;;  %v1167_v24 = vld [vmem:[%s1570_s0 + $0x38] sm:$0xff]  }
   0x8   :  { %1053 = vmatmul.mubr.msk.bf16.vlgmr.msra.gmra.mrb[0].mxu0 %vm151_vm0, %v1161_v4  ;;  %1069 = vmatmul.mubr.msk.bf16.vlgmr.msra.gmra.mrb[0].mxu1 %vm151_vm0, %v1169_v8  ;;  %v464_v21 = vsel %vm462_vm1, %v27_v19, 0  ;;  %v1175_v25 = vld [vmem:[%s1570_s0 + $0x78] sm:$0xff]   ;;  %v29_v26 = vld [vmem:[%s1572_s3] sm:$0xff]  ;;  %v30_v27 = vld [vmem:[%s1572_s3 + $0x8] sm:$0xff] }
   0x9   :  { %1056 = vmatprep.mubr.msk.bf16.mxu0 %vm151_vm0, %v1162_v5  ;;  %1072 = vmatprep.mubr.msk.bf16.mxu1 %vm151_vm0, %v1170_v9  ;;  %v32_v28 = vpack.c.bf16 %v30_v27, %v29_v26  ;;  %v31_v29 = vld [vmem:[%s1572_s3 + $0x10] sm:$0xf] }
   0xa   :  { %1084 = vmatprep.subr.bf16.mxu1 %v26_v15  ;;  %v33_v30 = vpack.c.bf16 %v31_v29, %v31_v29  ;;  %v1295_v32 = vld [vmem:[%s1569_s1 + $0x10] ss:$0 sm:$0xff] }
   0xb   :  { %1085 = vmatpush3.bf16.msra.mxu1 %v26_v15  ;;  %1120 = vmatprep.subr.bf16.mxu0 %v32_v28 }
   0xc   :  { %1158 = vmatprep.subr.msk.bf16.mxu1 %vm462_vm1, %v27_v19  ;;  %1121 = vmatpush3.bf16.msra.mxu0 %v32_v28  ;;  %v730_v31 = vsel %vm728_vm2, %v33_v30, 0 }
   0xd   :  { %1159 = vmatprep.subr.msk.bf16.mxu0 %vm728_vm2, %v33_v30 }
   0xf   :  { %1087 = vmatpush3.bf16.msra.mxu1 %v464_v21 }
  0x10   :  { %1057 = vmatmul.mubr.msk.bf16.gmra.mrb[4].mxu0 %vm151_vm0, %v1163_v6  ;;  %1073 = vmatmul.mubr.msk.bf16.gmra.mrb[4].mxu1 %vm151_vm0, %v1171_v11 }
  0x11   :  { %1060 = vmatprep.mubr.msk.bf16.mxu0 %vm151_vm0, %v1164_v10  ;;  %1076 = vmatprep.mubr.msk.bf16.mxu1 %vm151_vm0, %v1172_v12 }
  0x12   :  { %1123 = vmatpush3.bf16.msra.mxu0 %v730_v31 }
  0x18   :  { %1061 = vmatmul.mubr.msk.bf16.gmra.mrb[8].mxu0 %vm151_vm0, %v1165_v18  ;;  %1077 = vmatmul.mubr.msk.bf16.gmra.mrb[8].mxu1 %vm151_vm0, %v1173_v22 }
  0x19   :  { %1064 = vmatprep.mubr.msk.bf16.mxu0 %vm151_vm0, %v1166_v20  ;;  %1080 = vmatprep.mubr.msk.bf16.mxu1 %vm151_vm0, %v1174_v23 }
  0x20   :  { %1065 = vmatmul.mubr.msk.bf16.gmra.mrb[12].mxu0 %vm151_vm0, %v1167_v24  ;;  %1081 = vmatmul.mubr.msk.bf16.gmra.mrb[12].mxu1 %vm151_vm0, %v1175_v25 }
  0xdb   :  { %v1054_v33 = vpop.f32.mrb[0].mxu0  ;;  %v1070_v43 = vpop.f32.mrb[0].mxu1 }
  0xdc   :  { %v243_v34 = vadd.f32 %v1054_v33, %v1295_v32  ;;  %v234_v35 = vpop.f32.mrb[1].mxu0  ;;  %v307_v46 = vadd.f32 %v1070_v43, %v1295_v32  ;;  %v298_v47 = vpop.f32.mrb[1].mxu1 }
  0xdd   :  { %v235_v36 = vadd.f32 %v1295_v32, %v234_v35  ;;  %v1055_v37 = vpop.f32.mrb[2].mxu0  ;;  %v299_v49 = vadd.f32 %v1295_v32, %v298_v47  ;;  %v1071_v50 = vpop.f32.mrb[2].mxu1 }
  0xde   :  { %v246_v38 = vadd.f32 %v1055_v37, %v1295_v32  ;;  %v237_v39 = vpop.f32.mrb[3].mxu0  ;;  %v363_v41 = vmax.f32 %v243_v34, 0.0  ;;  %v379_v53 = vmax.f32 %v307_v46, 0.0  ;;  %v310_v54 = vadd.f32 %v1071_v50, %v1295_v32  ;;  %v301_v55 = vpop.f32.mrb[3].mxu1 }
  0xdf   :  { %v238_v40 = vadd.f32 %v1295_v32, %v237_v39  ;;  %v361_v44 = vmax.f32 %v235_v36, 0.0  ;;  %v377_v58 = vmax.f32 %v299_v49, 0.0  ;;  %v302_v59 = vadd.f32 %v1295_v32, %v301_v55 }
  0xe0   :  { %v364_v42 = vmax.f32 %v246_v38, 0.0  ;;  %v380_v62 = vmax.f32 %v310_v54, 0.0 }
  0xe1   :  { %v362_v45 = vmax.f32 %v238_v40, 0.0  ;;  %v378_v1 = vmax.f32 %v302_v59, 0.0 }
  0xe2   :  { %v394_v48 = vpack.c.bf16 %v364_v42, %v363_v41  ;;  %v1311_v3 = vpack.c.bf16 %v380_v62, %v379_v53 }
  0xe3   :  { %v393_v51 = vpack.c.bf16 %v362_v45, %v361_v44  ;;  %v1058_v52 = vpop.f32.mrb[4].mxu0  ;;  %v1313_v6 = vpack.c.bf16 %v378_v1, %v377_v58  ;;  %v1074_v7 = vpop.f32.mrb[4].mxu1 }
  0xe4   :  { %v259_v56 = vadd.f32 %v1058_v52, %v1295_v32  ;;  %v250_v57 = vpop.f32.mrb[5].mxu0  ;;  %v323_v10 = vadd.f32 %v1074_v7, %v1295_v32  ;;  %v314_v11 = vpop.f32.mrb[5].mxu1 }
  0xe5   :  { %v251_v60 = vadd.f32 %v1295_v32, %v250_v57  ;;  %v1059_v61 = vpop.f32.mrb[6].mxu0  ;;  %1088 = vmatprep.mubr.msk.bf16.mxu1 %vm413_vm3, %v393_v51  ;;  %v315_v13 = vadd.f32 %v1295_v32, %v314_v11  ;;  %v1075_v14 = vpop.f32.mrb[6].mxu1 }
  0xe6   :  { %v262_v63 = vadd.f32 %v1059_v61, %v1295_v32  ;;  %v253_v0 = vpop.f32.mrb[7].mxu0  ;;  %1089 = vmatmul.mubr.msk.bf16.vlgmr.msra.gmra.mrb[16].mxu1 %vm413_vm3, %v394_v48  ;;  %v367_v4 = vmax.f32 %v259_v56, 0.0  ;;  %v383_v17 = vmax.f32 %v323_v10, 0.0  ;;  %v326_v18 = vadd.f32 %v1075_v14, %v1295_v32  ;;  %v317_v19 = vpop.f32.mrb[7].mxu1 }
  0xe7   :  { %v254_v2 = vadd.f32 %v1295_v32, %v253_v0  ;;  %v365_v8 = vmax.f32 %v251_v60, 0.0  ;;  %v381_v22 = vmax.f32 %v315_v13, 0.0  ;;  %v318_v23 = vadd.f32 %v1295_v32, %v317_v19 }
  0xe8   :  { %v368_v5 = vmax.f32 %v262_v63, 0.0  ;;  %v384_v26 = vmax.f32 %v326_v18, 0.0 }
  0xe9   :  { %v366_v9 = vmax.f32 %v254_v2, 0.0  ;;  %v382_v29 = vmax.f32 %v318_v23, 0.0 }
  0xea   :  { %v396_v12 = vpack.c.bf16 %v368_v5, %v367_v4  ;;  %v404_v31 = vpack.c.bf16 %v384_v26, %v383_v17 }
  0xeb   :  { %v395_v15 = vpack.c.bf16 %v366_v9, %v365_v8  ;;  %v1062_v16 = vpop.f32.mrb[8].mxu0  ;;  %v403_v35 = vpack.c.bf16 %v382_v29, %v381_v22  ;;  %v1078_v36 = vpop.f32.mrb[8].mxu1 }
  0xec   :  { %v275_v20 = vadd.f32 %v1062_v16, %v1295_v32  ;;  %v266_v21 = vpop.f32.mrb[9].mxu0  ;;  %v339_v39 = vadd.f32 %v1078_v36, %v1295_v32  ;;  %v330_v40 = vpop.f32.mrb[9].mxu1 }
  0xed   :  { %v267_v24 = vadd.f32 %v1295_v32, %v266_v21  ;;  %v1063_v25 = vpop.f32.mrb[10].mxu0  ;;  %1092 = vmatprep.mubr.msk.bf16.mxu1 %vm413_vm3, %v395_v15  ;;  %v331_v42 = vadd.f32 %v1295_v32, %v330_v40  ;;  %v1079_v43 = vpop.f32.mrb[10].mxu1 }
  0xee   :  { %v278_v27 = vadd.f32 %v1063_v25, %v1295_v32  ;;  %v269_v28 = vpop.f32.mrb[11].mxu0  ;;  %1093 = vmatmul.mubr.msk.bf16.gmra.mrb[20].mxu1 %vm413_vm3, %v396_v12  ;;  %v371_v33 = vmax.f32 %v275_v20, 0.0  ;;  %v387_v46 = vmax.f32 %v339_v39, 0.0  ;;  %v342_v47 = vadd.f32 %v1079_v43, %v1295_v32  ;;  %v333_v48 = vpop.f32.mrb[11].mxu1 }
  0xef   :  { %v270_v30 = vadd.f32 %v1295_v32, %v269_v28  ;;  %v369_v37 = vmax.f32 %v267_v24, 0.0  ;;  %v385_v51 = vmax.f32 %v331_v42, 0.0  ;;  %v334_v52 = vadd.f32 %v1295_v32, %v333_v48 }
  0xf0   :  { %v372_v34 = vmax.f32 %v278_v27, 0.0  ;;  %v388_v55 = vmax.f32 %v342_v47, 0.0 }
  0xf1   :  { %v370_v38 = vmax.f32 %v270_v30, 0.0  ;;  %v386_v58 = vmax.f32 %v334_v52, 0.0 }
  0xf2   :  { %v398_v41 = vpack.c.bf16 %v372_v34, %v371_v33  ;;  %v406_v60 = vpack.c.bf16 %v388_v55, %v387_v46 }
  0xf3   :  { %v397_v44 = vpack.c.bf16 %v370_v38, %v369_v37  ;;  %v1066_v45 = vpop.f32.mrb[12].mxu0  ;;  %v405_v63 = vpack.c.bf16 %v386_v58, %v385_v51  ;;  %v1082_v0 = vpop.f32.mrb[12].mxu1 }
  0xf4   :  { %v291_v49 = vadd.f32 %v1066_v45, %v1295_v32  ;;  %v282_v50 = vpop.f32.mrb[13].mxu0  ;;  %v355_v4 = vadd.f32 %v1082_v0, %v1295_v32  ;;  %v346_v5 = vpop.f32.mrb[13].mxu1 }
  0xf5   :  { %v283_v53 = vadd.f32 %v1295_v32, %v282_v50  ;;  %v1067_v54 = vpop.f32.mrb[14].mxu0  ;;  %1096 = vmatprep.mubr.msk.bf16.mxu1 %vm413_vm3, %v397_v44  ;;  %v347_v8 = vadd.f32 %v1295_v32, %v346_v5  ;;  %v1083_v9 = vpop.f32.mrb[14].mxu1 }
  0xf6   :  { %v294_v56 = vadd.f32 %v1067_v54, %v1295_v32  ;;  %v285_v57 = vpop.f32.mrb[15].mxu0  ;;  %1097 = vmatmul.mubr.msk.bf16.gmra.mrb[24].mxu1 %vm413_vm3, %v398_v41  ;;  %v375_v61 = vmax.f32 %v291_v49, 0.0  ;;  %v391_v11 = vmax.f32 %v355_v4, 0.0  ;;  %v358_v12 = vadd.f32 %v1083_v9, %v1295_v32  ;;  %v349_v13 = vpop.f32.mrb[15].mxu1 }
  0xf7   :  { %v286_v59 = vadd.f32 %v1295_v32, %v285_v57  ;;  %v373_v1 = vmax.f32 %v283_v53, 0.0  ;;  %v389_v14 = vmax.f32 %v347_v8, 0.0  ;;  %v350_v15 = vadd.f32 %v1295_v32, %v349_v13  ;;  %v1354_v32 = vld [vmem:[%s1571_s2 + $0x1e] ss:$0 sm:$0xff] }
  0xf8   :  { %v376_v62 = vmax.f32 %v294_v56, 0.0  ;;  %v392_v16 = vmax.f32 %v358_v12, 0.0 }
  0xf9   :  { %v374_v2 = vmax.f32 %v286_v59, 0.0  ;;  %v390_v17 = vmax.f32 %v350_v15, 0.0 }
  0xfa   :  { %v400_v7 = vpack.c.bf16 %v376_v62, %v375_v61  ;;  %v408_v18 = vpack.c.bf16 %v392_v16, %v391_v11 }
  0xfb   :  { %v399_v10 = vpack.c.bf16 %v374_v2, %v373_v1  ;;  %v407_v19 = vpack.c.bf16 %v390_v17, %v389_v14 }
  0xfd   :  { %1100 = vmatprep.mubr.msk.bf16.mxu1 %vm413_vm3, %v399_v10 }
  0xfe   :  { %1101 = vmatmul.mubr.msk.bf16.gmra.mrb[28].mxu1 %vm413_vm3, %v400_v7 }
  0xff   :  { %1104 = vmatprep.mubr.msk.bf16.mxu1 %vm413_vm3, %v1313_v6 }
 0x106   :  { %1105 = vmatmul.mubr.msk.bf16.gmra.mrb[32].mxu1 %vm413_vm3, %v1311_v3 }
 0x107   :  { %1108 = vmatprep.mubr.msk.bf16.mxu1 %vm413_vm3, %v403_v35 }
 0x10e   :  { %1109 = vmatmul.mubr.msk.bf16.gmra.mrb[36].mxu1 %vm413_vm3, %v404_v31 }
 0x10f   :  { %1112 = vmatprep.mubr.msk.bf16.mxu1 %vm413_vm3, %v405_v63 }
 0x116   :  { %1113 = vmatmul.mubr.msk.bf16.gmra.mrb[40].mxu1 %vm413_vm3, %v406_v60 }
 0x117   :  { %1116 = vmatprep.mubr.msk.bf16.mxu1 %vm413_vm3, %v407_v19 }
 0x11e   :  { %1117 = vmatmul.mubr.msk.bf16.gmra.mrb[44].mxu1 %vm413_vm3, %v408_v18 }
 0x1b9   :  { %v1090_v6 = vpop.f32.mrb[16].mxu1 }
 0x1ba   :  { %v509_v3 = vadd.f32 %v1090_v6, %v1354_v32  ;;  %v500_v20 = vpop.f32.mrb[17].mxu1 }
 0x1bb   :  { %v501_v21 = vadd.f32 %v1354_v32, %v500_v20  ;;  %v1091_v22 = vpop.f32.mrb[18].mxu1 }
 0x1bc   :  { %v512_v23 = vadd.f32 %v1091_v22, %v1354_v32  ;;  %v503_v24 = vpop.f32.mrb[19].mxu1  ;;  %v629_v26 = vmax.f32 %v509_v3, 0.0 }
 0x1bd   :  { %v504_v25 = vadd.f32 %v1354_v32, %v503_v24  ;;  %v627_v28 = vmax.f32 %v501_v21, 0.0 }
 0x1be   :  { %v630_v27 = vmax.f32 %v512_v23, 0.0 }
 0x1bf   :  { %v628_v29 = vmax.f32 %v504_v25, 0.0 }
 0x1c0   :  { %v660_v30 = vpack.c.bf16 %v630_v27, %v629_v26 }
 0x1c1   :  { %v659_v31 = vpack.c.bf16 %v628_v29, %v627_v28  ;;  %v1094_v33 = vpop.f32.mrb[20].mxu1 }
 0x1c2   :  { %v525_v34 = vadd.f32 %v1094_v33, %v1354_v32  ;;  %v516_v35 = vpop.f32.mrb[21].mxu1 }
 0x1c3   :  { %v517_v36 = vadd.f32 %v1354_v32, %v516_v35  ;;  %v1095_v37 = vpop.f32.mrb[22].mxu1  ;;  %1124 = vmatprep.mubr.msk.bf16.mxu0 %vm679_vm4, %v659_v31 }
 0x1c4   :  { %v528_v38 = vadd.f32 %v1095_v37, %v1354_v32  ;;  %v519_v39 = vpop.f32.mrb[23].mxu1  ;;  %1125 = vmatmul.mubr.msk.bf16.vlgmr.msra.gmra.mrb[16].mxu0 %vm679_vm4, %v660_v30  ;;  %v633_v41 = vmax.f32 %v525_v34, 0.0 }
 0x1c5   :  { %v520_v40 = vadd.f32 %v1354_v32, %v519_v39  ;;  %v631_v43 = vmax.f32 %v517_v36, 0.0 }
 0x1c6   :  { %v634_v42 = vmax.f32 %v528_v38, 0.0 }
 0x1c7   :  { %v632_v44 = vmax.f32 %v520_v40, 0.0 }
 0x1c8   :  { %v662_v45 = vpack.c.bf16 %v634_v42, %v633_v41 }
 0x1c9   :  { %v661_v46 = vpack.c.bf16 %v632_v44, %v631_v43  ;;  %v1098_v47 = vpop.f32.mrb[24].mxu1 }
 0x1ca   :  { %v541_v48 = vadd.f32 %v1098_v47, %v1354_v32  ;;  %v532_v49 = vpop.f32.mrb[25].mxu1 }
 0x1cb   :  { %v533_v50 = vadd.f32 %v1354_v32, %v532_v49  ;;  %v1099_v51 = vpop.f32.mrb[26].mxu1  ;;  %1128 = vmatprep.mubr.msk.bf16.mxu0 %vm679_vm4, %v661_v46 }
 0x1cc   :  { %v544_v52 = vadd.f32 %v1099_v51, %v1354_v32  ;;  %v535_v53 = vpop.f32.mrb[27].mxu1  ;;  %1129 = vmatmul.mubr.msk.bf16.gmra.mrb[20].mxu0 %vm679_vm4, %v662_v45  ;;  %v637_v55 = vmax.f32 %v541_v48, 0.0 }
 0x1cd   :  { %v536_v54 = vadd.f32 %v1354_v32, %v535_v53  ;;  %v635_v57 = vmax.f32 %v533_v50, 0.0 }
 0x1ce   :  { %v638_v56 = vmax.f32 %v544_v52, 0.0 }
 0x1cf   :  { %v636_v58 = vmax.f32 %v536_v54, 0.0 }
 0x1d0   :  { %v664_v59 = vpack.c.bf16 %v638_v56, %v637_v55 }
 0x1d1   :  { %v663_v60 = vpack.c.bf16 %v636_v58, %v635_v57  ;;  %v1102_v61 = vpop.f32.mrb[28].mxu1 }
 0x1d2   :  { %v557_v62 = vadd.f32 %v1102_v61, %v1354_v32  ;;  %v548_v63 = vpop.f32.mrb[29].mxu1 }
 0x1d3   :  { %v549_v0 = vadd.f32 %v1354_v32, %v548_v63  ;;  %v1103_v1 = vpop.f32.mrb[30].mxu1  ;;  %1132 = vmatprep.mubr.msk.bf16.mxu0 %vm679_vm4, %v663_v60 }
 0x1d4   :  { %v560_v2 = vadd.f32 %v1103_v1, %v1354_v32  ;;  %v551_v4 = vpop.f32.mrb[31].mxu1  ;;  %1133 = vmatmul.mubr.msk.bf16.gmra.mrb[24].mxu0 %vm679_vm4, %v664_v59  ;;  %v641_v7 = vmax.f32 %v557_v62, 0.0 }
 0x1d5   :  { %v552_v5 = vadd.f32 %v1354_v32, %v551_v4  ;;  %v639_v9 = vmax.f32 %v549_v0, 0.0 }
 0x1d6   :  { %v642_v8 = vmax.f32 %v560_v2, 0.0 }
 0x1d7   :  { %v640_v10 = vmax.f32 %v552_v5, 0.0  ;;  %v1407_v5 = vld [vmem:[%s1572_s3 + $0x14] ss:$0 sm:$0xff] }
 0x1d8   :  { %v666_v11 = vpack.c.bf16 %v642_v8, %v641_v7 }
 0x1d9   :  { %v665_v12 = vpack.c.bf16 %v640_v10, %v639_v9  ;;  %v1106_v13 = vpop.f32.mrb[32].mxu1 }
 0x1da   :  { %v573_v14 = vadd.f32 %v1106_v13, %v1354_v32  ;;  %v564_v15 = vpop.f32.mrb[33].mxu1 }
 0x1db   :  { %v565_v16 = vadd.f32 %v1354_v32, %v564_v15  ;;  %v1107_v17 = vpop.f32.mrb[34].mxu1  ;;  %1136 = vmatprep.mubr.msk.bf16.mxu0 %vm679_vm4, %v665_v12 }
 0x1dc   :  { %v576_v18 = vadd.f32 %v1107_v17, %v1354_v32  ;;  %v567_v19 = vpop.f32.mrb[35].mxu1  ;;  %1137 = vmatmul.mubr.msk.bf16.gmra.mrb[28].mxu0 %vm679_vm4, %v666_v11  ;;  %v645_v3 = vmax.f32 %v573_v14, 0.0 }
 0x1dd   :  { %v568_v6 = vadd.f32 %v1354_v32, %v567_v19  ;;  %v643_v21 = vmax.f32 %v565_v16, 0.0 }
 0x1de   :  { %v646_v20 = vmax.f32 %v576_v18, 0.0 }
 0x1df   :  { %v644_v22 = vmax.f32 %v568_v6, 0.0 }
 0x1e0   :  { %v668_v23 = vpack.c.bf16 %v646_v20, %v645_v3 }
 0x1e1   :  { %v667_v24 = vpack.c.bf16 %v644_v22, %v643_v21  ;;  %v1110_v25 = vpop.f32.mrb[36].mxu1 }
 0x1e2   :  { %v589_v26 = vadd.f32 %v1110_v25, %v1354_v32  ;;  %v580_v27 = vpop.f32.mrb[37].mxu1 }
 0x1e3   :  { %v581_v28 = vadd.f32 %v1354_v32, %v580_v27  ;;  %v1111_v29 = vpop.f32.mrb[38].mxu1  ;;  %1140 = vmatprep.mubr.msk.bf16.mxu0 %vm679_vm4, %v667_v24 }
 0x1e4   :  { %v592_v30 = vadd.f32 %v1111_v29, %v1354_v32  ;;  %v583_v31 = vpop.f32.mrb[39].mxu1  ;;  %1141 = vmatmul.mubr.msk.bf16.gmra.mrb[32].mxu0 %vm679_vm4, %v668_v23  ;;  %v649_v34 = vmax.f32 %v589_v26, 0.0 }
 0x1e5   :  { %v584_v33 = vadd.f32 %v1354_v32, %v583_v31  ;;  %v647_v36 = vmax.f32 %v581_v28, 0.0 }
 0x1e6   :  { %v650_v35 = vmax.f32 %v592_v30, 0.0 }
 0x1e7   :  { %v648_v37 = vmax.f32 %v584_v33, 0.0 }
 0x1e8   :  { %v670_v38 = vpack.c.bf16 %v650_v35, %v649_v34 }
 0x1e9   :  { %v669_v39 = vpack.c.bf16 %v648_v37, %v647_v36  ;;  %v1114_v40 = vpop.f32.mrb[40].mxu1 }
 0x1ea   :  { %v605_v41 = vadd.f32 %v1114_v40, %v1354_v32  ;;  %v596_v42 = vpop.f32.mrb[41].mxu1 }
 0x1eb   :  { %v597_v43 = vadd.f32 %v1354_v32, %v596_v42  ;;  %v1115_v44 = vpop.f32.mrb[42].mxu1  ;;  %1144 = vmatprep.mubr.msk.bf16.mxu0 %vm679_vm4, %v669_v39 }
 0x1ec   :  { %v608_v45 = vadd.f32 %v1115_v44, %v1354_v32  ;;  %v599_v46 = vpop.f32.mrb[43].mxu1  ;;  %1145 = vmatmul.mubr.msk.bf16.gmra.mrb[36].mxu0 %vm679_vm4, %v670_v38  ;;  %v653_v48 = vmax.f32 %v605_v41, 0.0 }
 0x1ed   :  { %v600_v47 = vadd.f32 %v1354_v32, %v599_v46  ;;  %v651_v50 = vmax.f32 %v597_v43, 0.0 }
 0x1ee   :  { %v654_v49 = vmax.f32 %v608_v45, 0.0 }
 0x1ef   :  { %v652_v51 = vmax.f32 %v600_v47, 0.0 }
 0x1f0   :  { %v672_v52 = vpack.c.bf16 %v654_v49, %v653_v48 }
 0x1f1   :  { %v671_v53 = vpack.c.bf16 %v652_v51, %v651_v50  ;;  %v1118_v54 = vpop.f32.mrb[44].mxu1 }
 0x1f2   :  { %v621_v55 = vadd.f32 %v1118_v54, %v1354_v32  ;;  %v612_v56 = vpop.f32.mrb[45].mxu1 }
 0x1f3   :  { %v613_v57 = vadd.f32 %v1354_v32, %v612_v56  ;;  %v1119_v58 = vpop.f32.mrb[46].mxu1  ;;  %1148 = vmatprep.mubr.msk.bf16.mxu0 %vm679_vm4, %v671_v53 }
 0x1f4   :  { %v624_v59 = vadd.f32 %v1119_v58, %v1354_v32  ;;  %v615_v60 = vpop.f32.mrb[47].mxu1  ;;  %1149 = vmatmul.mubr.msk.bf16.gmra.mrb[40].mxu0 %vm679_vm4, %v672_v52  ;;  %v657_v62 = vmax.f32 %v621_v55, 0.0 }
 0x1f5   :  { %v616_v61 = vadd.f32 %v1354_v32, %v615_v60  ;;  %v655_v0 = vmax.f32 %v613_v57, 0.0 }
 0x1f6   :  { %v658_v63 = vmax.f32 %v624_v59, 0.0 }
 0x1f7   :  { %v656_v1 = vmax.f32 %v616_v61, 0.0 }
 0x1f8   :  { %v674_v2 = vpack.c.bf16 %v658_v63, %v657_v62 }
 0x1f9   :  { %v673_v4 = vpack.c.bf16 %v656_v1, %v655_v0 }
 0x1fb   :  { %1152 = vmatprep.mubr.msk.bf16.mxu0 %vm679_vm4, %v673_v4 }
 0x1fc   :  { %1153 = vmatmul.mubr.msk.bf16.gmra.mrb[44].mxu0 %vm679_vm4, %v674_v2 }
 0x297   :  { %v1126_v7 = vpop.f32.mrb[16].mxu0 }
 0x298   :  { %v775_v8 = vadd.f32 %v1126_v7, %v1407_v5  ;;  %v766_v32 = vpop.f32.mrb[17].mxu0 }
 0x299   :  { %v767_v9 = vadd.f32 %v1407_v5, %v766_v32  ;;  %v1127_v10 = vpop.f32.mrb[18].mxu0 }
 0x29a   :  { %896 = vst.msk [vmem:[%s1573_s4 + $0x10] sm:$0xff] %vm893_vm5, %v775_v8  ;;  %v778_v11 = vadd.f32 %v1127_v10, %v1407_v5  ;;  %v769_v12 = vpop.f32.mrb[19].mxu0 }
 0x29b   :  { %894 = vst.msk [vmem:[%s1573_s4] sm:$0xff] %vm893_vm5, %v767_v9  ;;  %v770_v13 = vadd.f32 %v1407_v5, %v769_v12 }
 0x29c   :  { %897 = vst.msk [vmem:[%s1573_s4 + $0x18] sm:$0xff] %vm893_vm5, %v778_v11 }
 0x29d   :  { %895 = vst.msk [vmem:[%s1573_s4 + $0x8] sm:$0xff] %vm893_vm5, %v770_v13 }
 0x29f   :  { %v1130_v14 = vpop.f32.mrb[20].mxu0 }
 0x2a0   :  { %v791_v15 = vadd.f32 %v1130_v14, %v1407_v5  ;;  %v782_v16 = vpop.f32.mrb[21].mxu0 }
 0x2a1   :  { %v783_v17 = vadd.f32 %v1407_v5, %v782_v16  ;;  %v1131_v18 = vpop.f32.mrb[22].mxu0 }
 0x2a2   :  { %900 = vst.msk [vmem:[%s1573_s4 + $0x30] sm:$0xff] %vm893_vm5, %v791_v15  ;;  %v794_v19 = vadd.f32 %v1131_v18, %v1407_v5  ;;  %v785_v6 = vpop.f32.mrb[23].mxu0 }
 0x2a3   :  { %898 = vst.msk [vmem:[%s1573_s4 + $0x20] sm:$0xff] %vm893_vm5, %v783_v17  ;;  %v786_v3 = vadd.f32 %v1407_v5, %v785_v6 }
 0x2a4   :  { %901 = vst.msk [vmem:[%s1573_s4 + $0x38] sm:$0xff] %vm893_vm5, %v794_v19 }
 0x2a5   :  { %899 = vst.msk [vmem:[%s1573_s4 + $0x28] sm:$0xff] %vm893_vm5, %v786_v3 }
 0x2a7   :  { %v1134_v20 = vpop.f32.mrb[24].mxu0 }
 0x2a8   :  { %v807_v21 = vadd.f32 %v1134_v20, %v1407_v5  ;;  %v798_v22 = vpop.f32.mrb[25].mxu0 }
 0x2a9   :  { %v799_v23 = vadd.f32 %v1407_v5, %v798_v22  ;;  %v1135_v24 = vpop.f32.mrb[26].mxu0 }
 0x2aa   :  { %904 = vst.msk [vmem:[%s1573_s4 + $0x50] sm:$0xff] %vm893_vm5, %v807_v21  ;;  %v810_v25 = vadd.f32 %v1135_v24, %v1407_v5  ;;  %v801_v26 = vpop.f32.mrb[27].mxu0 }
 0x2ab   :  { %902 = vst.msk [vmem:[%s1573_s4 + $0x40] sm:$0xff] %vm893_vm5, %v799_v23  ;;  %v802_v27 = vadd.f32 %v1407_v5, %v801_v26 }
 0x2ac   :  { %905 = vst.msk [vmem:[%s1573_s4 + $0x58] sm:$0xff] %vm893_vm5, %v810_v25 }
 0x2ad   :  { %903 = vst.msk [vmem:[%s1573_s4 + $0x48] sm:$0xff] %vm893_vm5, %v802_v27 }
 0x2af   :  { %v1138_v28 = vpop.f32.mrb[28].mxu0 }
 0x2b0   :  { %v823_v29 = vadd.f32 %v1138_v28, %v1407_v5  ;;  %v814_v30 = vpop.f32.mrb[29].mxu0 }
 0x2b1   :  { %v815_v31 = vadd.f32 %v1407_v5, %v814_v30  ;;  %v1139_v33 = vpop.f32.mrb[30].mxu0 }
 0x2b2   :  { %908 = vst.msk [vmem:[%s1573_s4 + $0x70] sm:$0xff] %vm893_vm5, %v823_v29  ;;  %v826_v34 = vadd.f32 %v1139_v33, %v1407_v5  ;;  %v817_v35 = vpop.f32.mrb[31].mxu0 }
 0x2b3   :  { %906 = vst.msk [vmem:[%s1573_s4 + $0x60] sm:$0xff] %vm893_vm5, %v815_v31  ;;  %v818_v36 = vadd.f32 %v1407_v5, %v817_v35 }
 0x2b4   :  { %909 = vst.msk [vmem:[%s1573_s4 + $0x78] sm:$0xff] %vm893_vm5, %v826_v34 }
 0x2b5   :  { %907 = vst.msk [vmem:[%s1573_s4 + $0x68] sm:$0xff] %vm893_vm5, %v818_v36 }
 0x2b7   :  { %v1142_v37 = vpop.f32.mrb[32].mxu0 }
 0x2b8   :  { %v839_v38 = vadd.f32 %v1142_v37, %v1407_v5  ;;  %v830_v39 = vpop.f32.mrb[33].mxu0 }
 0x2b9   :  { %v831_v40 = vadd.f32 %v1407_v5, %v830_v39  ;;  %v1143_v41 = vpop.f32.mrb[34].mxu0 }
 0x2ba   :  { %912 = vst.msk [vmem:[%s1573_s4 + $0x90] sm:$0xff] %vm893_vm5, %v839_v38  ;;  %v842_v42 = vadd.f32 %v1143_v41, %v1407_v5  ;;  %v833_v43 = vpop.f32.mrb[35].mxu0 }
 0x2bb   :  { %910 = vst.msk [vmem:[%s1573_s4 + $0x80] sm:$0xff] %vm893_vm5, %v831_v40  ;;  %v834_v44 = vadd.f32 %v1407_v5, %v833_v43 }
 0x2bc   :  { %913 = vst.msk [vmem:[%s1573_s4 + $0x98] sm:$0xff] %vm893_vm5, %v842_v42 }
 0x2bd   :  { %911 = vst.msk [vmem:[%s1573_s4 + $0x88] sm:$0xff] %vm893_vm5, %v834_v44 }
 0x2bf   :  { %v1146_v45 = vpop.f32.mrb[36].mxu0 }
 0x2c0   :  { %v855_v46 = vadd.f32 %v1146_v45, %v1407_v5  ;;  %v846_v47 = vpop.f32.mrb[37].mxu0 }
 0x2c1   :  { %v847_v48 = vadd.f32 %v1407_v5, %v846_v47  ;;  %v1147_v49 = vpop.f32.mrb[38].mxu0 }
 0x2c2   :  { %916 = vst.msk [vmem:[%s1573_s4 + $0xb0] sm:$0xff] %vm893_vm5, %v855_v46  ;;  %v858_v50 = vadd.f32 %v1147_v49, %v1407_v5  ;;  %v849_v51 = vpop.f32.mrb[39].mxu0 }
 0x2c3   :  { %914 = vst.msk [vmem:[%s1573_s4 + $0xa0] sm:$0xff] %vm893_vm5, %v847_v48  ;;  %v850_v52 = vadd.f32 %v1407_v5, %v849_v51 }
 0x2c4   :  { %917 = vst.msk [vmem:[%s1573_s4 + $0xb8] sm:$0xff] %vm893_vm5, %v858_v50 }
 0x2c5   :  { %915 = vst.msk [vmem:[%s1573_s4 + $0xa8] sm:$0xff] %vm893_vm5, %v850_v52 }
 0x2c7   :  { %v1150_v53 = vpop.f32.mrb[40].mxu0 }
 0x2c8   :  { %v871_v54 = vadd.f32 %v1150_v53, %v1407_v5  ;;  %v862_v55 = vpop.f32.mrb[41].mxu0 }
 0x2c9   :  { %v863_v56 = vadd.f32 %v1407_v5, %v862_v55  ;;  %v1151_v57 = vpop.f32.mrb[42].mxu0 }
 0x2ca   :  { %920 = vst.msk [vmem:[%s1573_s4 + $0xd0] sm:$0xff] %vm893_vm5, %v871_v54  ;;  %v874_v58 = vadd.f32 %v1151_v57, %v1407_v5  ;;  %v865_v59 = vpop.f32.mrb[43].mxu0 }
 0x2cb   :  { %918 = vst.msk [vmem:[%s1573_s4 + $0xc0] sm:$0xff] %vm893_vm5, %v863_v56  ;;  %v866_v60 = vadd.f32 %v1407_v5, %v865_v59 }
 0x2cc   :  { %921 = vst.msk [vmem:[%s1573_s4 + $0xd8] sm:$0xff] %vm893_vm5, %v874_v58 }
 0x2cd   :  { %919 = vst.msk [vmem:[%s1573_s4 + $0xc8] sm:$0xff] %vm893_vm5, %v866_v60 }
 0x2cf   :  { %v1154_v61 = vpop.f32.mrb[44].mxu0 }
 0x2d0   :  { %v887_v62 = vadd.f32 %v1154_v61, %v1407_v5  ;;  %v878_v63 = vpop.f32.mrb[45].mxu0 }
 0x2d1   :  { %v879_v0 = vadd.f32 %v1407_v5, %v878_v63  ;;  %v1155_v1 = vpop.f32.mrb[46].mxu0 }
 0x2d2   :  { %924 = vst.msk [vmem:[%s1573_s4 + $0xf0] sm:$0xff] %vm893_vm5, %v887_v62  ;;  %v890_v2 = vadd.f32 %v1155_v1, %v1407_v5  ;;  %v881_v4 = vpop.f32.mrb[47].mxu0 }
 0x2d3   :  { %922 = vst.msk [vmem:[%s1573_s4 + $0xe0] sm:$0xff] %vm893_vm5, %v879_v0  ;;  %v882_v7 = vadd.f32 %v1407_v5, %v881_v4 }
 0x2d4   :  { %925 = vst.msk [vmem:[%s1573_s4 + $0xf8] sm:$0xff] %vm893_vm5, %v890_v2 }
 0x2d5   :  { %923 = vst.msk [vmem:[%s1573_s4 + $0xe8] sm:$0xff] %vm893_vm5, %v882_v7 }

</bundles_post_ra>
